<compile_context>
chip_gen: v5e
topology: v5e:2x2
jax: 0.10.0
libtpu: 0.0.40
codegen_flags: <defaults>
</compile_context>

<pallas_src>
import functools

import jax
import jax.numpy as jnp
from jax.experimental import pallas as pl
from jax.experimental.pallas import tpu as pltpu


def _tsm_kernel(x_ref, o_ref, *, T, c, fold, direction):
    """Refs are (1, T*c, hw_blk) VMEM tiles.

    Pass-through copy first, then overwrite the `fold`-wide channel bands that
    shift across segments; boundary segments get zeros (PyTorch semantics).
    All slices are static Python ints -> plain vector loads/stores.
    """
    o_ref[...] = x_ref[...]
    if fold <= 0:
        return
    zeros = jnp.zeros((1, fold, o_ref.shape[-1]), dtype=o_ref.dtype)

    if direction in ('left', 'both'):
        # out[t, :fold] = x[t+1, :fold];  out[T-1, :fold] = 0
        for t in range(T - 1):
            o_ref[:, t * c:t * c + fold, :] = \
                x_ref[:, (t + 1) * c:(t + 1) * c + fold, :]
        o_ref[:, (T - 1) * c:(T - 1) * c + fold, :] = zeros

    if direction in ('right', 'both'):
        off = fold if direction == 'both' else 0
        # out[t, off:off+fold] = x[t-1, off:off+fold];  out[0, off:off+fold] = 0
        for t in range(1, T):
            o_ref[:, t * c + off:t * c + off + fold, :] = \
                x_ref[:, (t - 1) * c + off:(t - 1) * c + off + fold, :]
        o_ref[:, off:off + fold, :] = zeros


def _pick_hw_block(hw, rows, itemsize, target_bytes=2 << 20):
    """Largest lane-dense (multiple-of-128) divisor of hw with rows*blk*itemsize
    <= target; falls back to the full hw when hw isn't a 128 multiple."""
    if hw % 128 != 0 or rows * hw * itemsize <= target_bytes:
        return hw
    best = 128
    for k in range(1, hw // 128 + 1):
        blk = 128 * k
        if hw % blk == 0 and rows * blk * itemsize <= target_bytes:
            best = blk
    return best


def temporal_shift(x, n_segment=4, fold_div=8, direction='left', split=False):
    """Pallas implementation of TemporalShift.forward.

    x: (bz, nt, h, w), nt divisible by n_segment.
    Returns (bz, nt, h, w), or (bz, n_segment*2*fold, h, w) when split=True.
    """
    bz, nt, h, w = x.shape
    assert nt % n_segment == 0
    T = n_segment
    c = nt // T
    fold = c // fold_div
    hw = h * w
    if direction not in ('left', 'right'):
        direction = 'both'

    if split:
        assert fold > 0, "split=True requires fold >= 1"
        # Only channels [0, 2*fold) of each segment are ever read or written in
        # the split output; slice them out so the kernel touches ~4x less HBM.
        c_eff = 2 * fold
        xin = x.reshape(bz, T, c, hw)[:, :, :c_eff, :].reshape(bz, T * c_eff, hw)
    else:
        c_eff = c
        xin = x.reshape(bz, T * c_eff, hw)

    rows = T * c_eff
    hw_blk = _pick_hw_block(hw, rows, xin.dtype.itemsize)
    n_hw = hw // hw_blk

    kernel = functools.partial(
        _tsm_kernel, T=T, c=c_eff, fold=fold, direction=direction)

    blk = (1, rows, hw_blk)
    out = pl.pallas_call(
        kernel,
        out_shape=jax.ShapeDtypeStruct((bz, rows, hw), xin.dtype),
        grid_spec=pltpu.PrefetchScalarGridSpec(
            num_scalar_prefetch=0,
            grid=(bz, n_hw),
            in_specs=[pl.BlockSpec(blk, lambda b, j: (b, 0, j))],
            out_specs=pl.BlockSpec(blk, lambda b, j: (b, 0, j)),
        ),
        compiler_params=pltpu.CompilerParams(
            dimension_semantics=("parallel", "parallel")),
    )(xin)

    if split:
        return out.reshape(bz, T * 2 * fold, h, w)
    return out.reshape(bz, nt, h, w)


def temporal_shift_ref(x, n_segment=4, fold_div=8, direction='left', split=False):
    """Pure-JAX reference matching the PyTorch semantics exactly."""
    bz, nt, h, w = x.shape
    c = nt // n_segment
    xr = x.reshape(bz, n_segment, c, h, w)
    fold = c // fold_div
    out = jnp.zeros_like(xr)
    if direction == 'left':
        out = out.at[:, :-1, :fold].set(xr[:, 1:, :fold])
        out = out.at[:, :, fold:].set(xr[:, :, fold:])
    elif direction == 'right':
        out = out.at[:, 1:, :fold].set(xr[:, :-1, :fold])
        out = out.at[:, :, fold:].set(xr[:, :, fold:])
    else:
        out = out.at[:, :-1, :fold].set(xr[:, 1:, :fold])
        out = out.at[:, 1:, fold:2 * fold].set(xr[:, :-1, fold:2 * fold])
        out = out.at[:, :, 2 * fold:].set(xr[:, :, 2 * fold:])
    if split:
        p1 = out[:, :, : 2 * fold]
        return p1.reshape(bz, n_segment * 2 * fold, h, w)
    return out.reshape(bz, nt, h, w)


if __name__ == "__main__":
    # Module defaults: n_segment=4, n_div=8, direction='left', split=False.
    # Need c = nt // n_segment >= fold_div for a nonzero fold -> nt = 32 (c=8, fold=1).
    key = jax.random.PRNGKey(0)
    bz, nt, h, w = 2, 32, 8, 16  # h*w = 128 -> lane-dense tiles
    x = jax.random.normal(key, (bz, nt, h, w), dtype=jnp.float32)

    ok = True
    for direction, split in [('left', False), ('right', False),
                             ('both', False), ('left', True)]:
        got = temporal_shift(x, n_segment=4, fold_div=8,
                             direction=direction, split=split)
        got = jax.block_until_ready(got)
        want = temporal_shift_ref(x, n_segment=4, fold_div=8,
                                  direction=direction, split=split)
        if got.shape != want.shape or not jnp.allclose(got, want):
            ok = False
            print(f"MISMATCH direction={direction} split={split}")

    if ok:
        print("KERNEL_OK")
</pallas_src>

<mosaic_0001>
module attributes {stable_mosaic.version = 11 : i64} {
  func.func @_tsm_kernel(%arg0: i32, %arg1: i32, %arg2: memref<1x32x128xf32, #tpu.memory_space<vmem>>, %arg3: memref<1x32x128xf32, #tpu.memory_space<vmem>>) attributes {dimension_semantics = [#tpu.dimension_semantics<parallel>, #tpu.dimension_semantics<parallel>], iteration_bounds = array<i64: 2, 1>, scalar_prefetch = 0 : i64, scratch_operands = 0 : i64, tpu.core_type = #tpu.core_type<tc>, window_params = [{transform_indices = @transform_0, window_bounds = array<i64: 1, 32, 128>}, {transform_indices = @transform_1, window_bounds = array<i64: 1, 32, 128>}]} {
    %c0 = arith.constant 0 : index
    %c0_0 = arith.constant 0 : index
    %c0_1 = arith.constant 0 : index
    %0 = vector.load %arg2[%c0, %c0_0, %c0_1] : memref<1x32x128xf32, #tpu.memory_space<vmem>>, vector<1x32x128xf32>
    %c0_2 = arith.constant 0 : index
    %c0_3 = arith.constant 0 : index
    %c0_4 = arith.constant 0 : index
    %1 = vector.load %arg3[%c0_2, %c0_3, %c0_4] : memref<1x32x128xf32, #tpu.memory_space<vmem>>, vector<1x32x128xf32>
    tpu.vector_store %arg3[%c0_2, %c0_3, %c0_4], %0 {strides = array<i32>} : memref<1x32x128xf32, #tpu.memory_space<vmem>>, vector<1x32x128xf32>,
    %cst = arith.constant 0.000000e+00 : f32
    %2 = vector.broadcast %cst : f32 to vector<1x1x128xf32>
    %c0_5 = arith.constant 0 : index
    %c8 = arith.constant 8 : index
    %c0_6 = arith.constant 0 : index
    %3 = vector.load %arg2[%c0_5, %c8, %c0_6] : memref<1x32x128xf32, #tpu.memory_space<vmem>>, vector<1x1x128xf32>
    %c0_7 = arith.constant 0 : index
    %c0_8 = arith.constant 0 : index
    %c0_9 = arith.constant 0 : index
    %4 = vector.load %arg3[%c0_7, %c0_8, %c0_9] : memref<1x32x128xf32, #tpu.memory_space<vmem>>, vector<1x1x128xf32>
    tpu.vector_store %arg3[%c0_7, %c0_8, %c0_9], %3 {strides = array<i32>} : memref<1x32x128xf32, #tpu.memory_space<vmem>>, vector<1x1x128xf32>,
    %c0_10 = arith.constant 0 : index
    %c16 = arith.constant 16 : index
    %c0_11 = arith.constant 0 : index
    %5 = vector.load %arg2[%c0_10, %c16, %c0_11] : memref<1x32x128xf32, #tpu.memory_space<vmem>>, vector<1x1x128xf32>
    %c0_12 = arith.constant 0 : index
    %c8_13 = arith.constant 8 : index
    %c0_14 = arith.constant 0 : index
    %6 = vector.load %arg3[%c0_12, %c8_13, %c0_14] : memref<1x32x128xf32, #tpu.memory_space<vmem>>, vector<1x1x128xf32>
    tpu.vector_store %arg3[%c0_12, %c8_13, %c0_14], %5 {strides = array<i32>} : memref<1x32x128xf32, #tpu.memory_space<vmem>>, vector<1x1x128xf32>,
    %c0_15 = arith.constant 0 : index
    %c24 = arith.constant 24 : index
    %c0_16 = arith.constant 0 : index
    %7 = vector.load %arg2[%c0_15, %c24, %c0_16] : memref<1x32x128xf32, #tpu.memory_space<vmem>>, vector<1x1x128xf32>
    %c0_17 = arith.constant 0 : index
    %c16_18 = arith.constant 16 : index
    %c0_19 = arith.constant 0 : index
    %8 = vector.load %arg3[%c0_17, %c16_18, %c0_19] : memref<1x32x128xf32, #tpu.memory_space<vmem>>, vector<1x1x128xf32>
    tpu.vector_store %arg3[%c0_17, %c16_18, %c0_19], %7 {strides = array<i32>} : memref<1x32x128xf32, #tpu.memory_space<vmem>>, vector<1x1x128xf32>,
    %c0_20 = arith.constant 0 : index
    %c24_21 = arith.constant 24 : index
    %c0_22 = arith.constant 0 : index
    %9 = vector.load %arg3[%c0_20, %c24_21, %c0_22] : memref<1x32x128xf32, #tpu.memory_space<vmem>>, vector<1x1x128xf32>
    tpu.vector_store %arg3[%c0_20, %c24_21, %c0_22], %2 {strides = array<i32>} : memref<1x32x128xf32, #tpu.memory_space<vmem>>, vector<1x1x128xf32>,
    return
  }
  func.func @transform_0(%arg0: i32, %arg1: i32) -> (i32, i32, i32) {
    %c0_i32 = arith.constant 0 : i32
    %c0_i32_0 = arith.constant 0 : i32
    return %arg0, %c0_i32, %arg1 : i32, i32, i32
  }
  func.func @transform_1(%arg0: i32, %arg1: i32) -> (i32, i32, i32) {
    %c0_i32 = arith.constant 0 : i32
    %c0_i32_0 = arith.constant 0 : i32
    return %arg0, %c0_i32, %arg1 : i32, i32, i32
  }
}

</mosaic_0001>

<bundles_post_ra>
// kernel: tpu_custom_call.1
= control target key start
LH: loop header
LB: loop body
LE: loop exit
PB: predicated region body
PF: predicated region fallthrough
CT: control target
= control target key end

     0   :  { %6 = vsyncpa [#allocation3], 0  ;;  %s604_s0 = inlined_call_operand.hbm [shape: f32[2,32,128], index: 0, kind: input, shape index: {}]   ;;  %s605_s1 = inlined_call_operand.hbm [shape: f32[2,32,128], index: 1, kind: output, shape index: {}]  }
   0x1   :  { %8 = vsyncpa [#allocation3 + $0x1], 0 }
   0x2   :  { %9 = vsyncpa [#allocation4], 0 }
   0x3   :  { %11 = vsyncpa [#allocation4 + $0x1], 0  ;;  %s484_s6 = smov 0   ;;  %s486_s7 = smov 0  }
   0x4   :  { %s488_s8 = smov 0   ;;  %s490_s9 = smov 0  }
   0x5   :  { %s492_s10 = smov 0   ;;  %s494_s11 = smov 0  }
   0x6 LB: > { %s271_s12 = sadd.s32 4294967295, %s467_s11   ;;  %s272_s13 = sadd.s32 4294967294, %s467_s11   ;;  %s467_s11 = sphi %s494_s11, %s17_s11   ;;  %s463_s10 = sphi %s492_s10, %s614_s10   ;;  %s459_s9 = sphi %s490_s9, %s613_s9   ;;  %s455_s8 = sphi %s488_s8, %s612_s8   ;;  %s451_s7 = sphi %s486_s7, %s611_s7   ;;  %s447_s6 = sphi %s484_s6, %s610_s6  }
   0x7   : > { %s29_s14 = sadd.s32 1, %s463_s10  ;;  %s38_s15 = sadd.s32 1, %s455_s8 }
   0x8   : > { %p31_p0 = scmp.ge.s32.totalorder %s29_s14, 2  ;;  %p45_p1 = scmp.ne.s32.totalorder %s455_s8, %s451_s7 }
   0x9   : > { %p46_p2 = scmp.eq.s32.totalorder %s467_s11, 0  ;;  %p51_p3 = scmp.ne.s32.totalorder %s451_s7, %s447_s6 }
   0xa   : > { %s616_s14 = smov (%p31_p0, %s29_s14), 0  ;;  %p52_p5 = scmp.eq.s32.totalorder %s271_s12, 0 }
   0xb   : > { %p525_p4 = por %p46_p2, %p45_p1  ;;  %s33_s17 = ssub.s32 %s463_s10, %s616_s14 }
   0xc   : > { %p77_p6 = scmp.eq.s32.totalorder %s271_s12, 1  ;;  %p36_p7 = scmp.eq.s32.totalorder %s33_s17, 0 }
   0xd   : > { %p531_p8 = por %p52_p5, %p51_p3  ;;  %p83_p10 = scmp.eq.s32.totalorder %s272_s13, 1 }
   0xe   : > { %p535_p9 = por %p77_p6, %p45_p1  ;;  %p274_p12 = scmp.ge.s32.totalorder %s467_s11, 2 }
   0xf   : > { %s540_s20 = scalar_select %p36_p7, %s455_s8, %s38_s15  }
  0x10   : > { %p542_p11 = por %p83_p10, %p51_p3  ;;  %p300_p13 = scmp.lt.s32.totalorder %s467_s11, 2 }
  0x11   : > { %s103_s22 = sand.u32 1, %s455_s8   ;;  %s286_s24 = sshll.u32 %s463_s10, 5 }
  0x12   : > { %s275_s23 = sshll.u32 %s103_s22, 5  ;;  %s113_s27 = scalar_lea.hbm %s604_s0, %s286_s24 }
  0x13   : > { %s107_s28 = scalar_lea.vmem [#allocation2], %s275_s23  ;;  %s114_s30 = sshll.u32 %s113_s27, 4  ;;  %s115_s30 = int_to_ptr.hbm [resolvable:$true] %s114_s30 }
  0x14   : > { %s116_s29 = sshll.u32 %s107_s28, 4  ;;  %p293_p0 = pnand %p300_p13, %p525_p4  ;;  %s117_s29 = int_to_ptr.vmem [resolvable:$true] %s116_s29 }
  0x15   : > { %p278_p1 = scmp.ge.s32.totalorder %s467_s11, 1  ;;  %s104_s2 = scalar_lea.sflag [#allocation3], %s103_s22 }
  0x16   : > { %s469_s3 = smov 128   ;;  %s470_s4 = smov 8  }
  0x17   : > { %295 = dma.hbm_to_vmem [thread:$0]  (!%p293_p0), %s115_s30, 512, %s117_s29, %s104_s2, %s469_s3, %s469_s3, %s470_s4  }
  0x18   : > { %p124_p2 = scmp.lt.s32.totalorder %s467_s11, 3 }
  0x1a   : > { %p125_p3 = pnand %p278_p1, %p124_p2 }
  0x1b   : > { %s558_s5 = sand.u32 (!%p125_p3), 1, %s451_s7  }
  0x1c   : > { %128 = sbr.rel (%p125_p3) target bundleno = 50 (0x32), region = 24  ;;  %s279_s12 = sshll.u32 (!%p125_p3), %s558_s5, 5 }
  0x1d   : > { %s131_s13 = scalar_lea.sflag (!%p125_p3), [#allocation3], %s558_s5  ;;  %s134_s15 = scalar_lea.vmem (!%p125_p3), [#allocation2], %s279_s12 }
  0x21   : > { %438 = dma.done.wait (%p531_p8), %s131_s13, 512  }
  0x22   : > { %440 = vsyncadd (%p531_p8), %s131_s13, 4294966784  ;;  %s287_s16 = sshll.u32 %s459_s9, 5  ;;  %v154_v0 = vld [vmem:[%s134_s15] sm:$0xff]  ;;  %v155_v1 = vld [vmem:[%s134_s15 + $0x8] sm:$0xff]  ;;  %s153_s24 = scalar_lea.vmem [#allocation5], %s279_s12  ;;  %v471_v7 = vmov 0.0  }
  0x23   : > { %v156_v2 = vld [vmem:[%s134_s15 + $0x10] sm:$0xff]  ;;  %s182_s23 = scalar_lea.hbm %s605_s1, %s287_s16  ;;  %158 = vst [vmem:[%s153_s24] sm:$0xff] %v154_v0  ;;  %v157_v3 = vld [vmem:[%s134_s15 + $0x18] sm:$0xff]  ;;  %s183_s25 = sshll.u32 %s153_s24, 4  ;;  %v162_v4 = vld [vmem:[%s134_s15 + $0x8] sm:$0x1]  ;;  %s184_s25 = int_to_ptr.vmem [resolvable:$true] %s183_s25 }
  0x24   : > { %159 = vst [vmem:[%s153_s24 + $0x8] sm:$0xff] %v155_v1  ;;  %v164_v5 = vld [vmem:[%s134_s15 + $0x10] sm:$0x1]  ;;  %s185_s18 = sshll.u32 %s182_s23, 4  ;;  %v166_v6 = vld [vmem:[%s134_s15 + $0x18] sm:$0x1]  ;;  %s186_s18 = int_to_ptr.hbm [resolvable:$true] %s185_s18 }
  0x25   : > { %160 = vst [vmem:[%s153_s24 + $0x10] sm:$0xff] %v156_v2  ;;  %s170_s9 = scalar_lea.sflag [#allocation4], %s558_s5  ;;  %s399_s26 = sshra.s32 %s186_s18, 4  ;;  %s400_s26 = int_to_ptr.hbm [resolvable:$true] %s399_s26 }
  0x26   : > { %161 = vst [vmem:[%s153_s24 + $0x18] sm:$0xff] %v157_v3  ;;  %s401_s27 = scalar_lea.hbm %s400_s26, 32  ;;  %s405_s30 = scalar_lea.hbm %s605_s1, 64 }
  0x27   : > { %163 = vst [vmem:[%s153_s24] sm:$0x1] %v162_v4  ;;  %p402_p4 = scmp.ne.s32.totalorder %s400_s26, %s401_s27  ;;  %p406_p7 = scmp.lt.s32.totalorder %s400_s26, %s605_s1 }
  0x28   : > { %165 = vst [vmem:[%s153_s24 + $0x8] sm:$0x1] %v164_v5  ;;  %p407_p8 = scmp.lt.s32.totalorder %s405_s30, %s401_s27 }
  0x29   : > { %167 = vst [vmem:[%s153_s24 + $0x10] sm:$0x1] %v166_v6  ;;  %p403_p5 = pnand %p402_p4, %p535_p9 }
  0x2a   : > { %168 = vst [vmem:[%s153_s24 + $0x18] sm:$0x1] %v471_v7  ;;  %p408_p10 = por %p407_p8, %p406_p7 }
  0x2b   : > { %p404_p6 = pneg %p403_p5 }
  0x2d   : > { %p409_p13 = pnand %p408_p10, %p404_p6 }
  0x2f   : > { %412 = shalt.err (!%p409_p13)
}
  0x30   : > { %s472_s4 = smov 128   ;;  %s473_s5 = smov 8  }
  0x31   : > { %290 = dma.vmem_to_hbm [thread:$0]  (%p535_p9), %s184_s25, 512, %s186_s18, %s170_s9, %s472_s4, %s472_s4, %s473_s5  }
  0x32 PF: > { %s200_s12 = sand.u32 1, %s447_s6   ;;  %p297_p0 = pnand %p274_p12, %p542_p11 }
  0x33   : > { %s201_s13 = scalar_lea.sflag [#allocation4], %s200_s12 }
  0x34   : > { %p298_p1 = pneg %p297_p0 }
  0x36   : > { %442 = dma.done.wait (%p298_p1), %s201_s13, 512  }
  0x37   : > { %444 = vsyncadd (%p298_p1), %s201_s13, 4294966784  ;;  %s17_s11 = sadd.s32 1, %s467_s11   ;;  %s610_s6 = smov %s451_s7 }
  0x38   : > { %p14_p2 = scmp.ge.s32.totalorder %s17_s11, 4   ;;  %s611_s7 = smov %s455_s8 }
  0x39   : > { %s612_s8 = smov %s540_s20  ;;  %s613_s9 = smov %s463_s10 }
  0x3a   : > { %s614_s10 = smov %s616_s14  ;;  %16 = sbr.rel (!%p14_p2) target bundleno = 6 (0x6), region = 69 }
  0x3f   :  { %207 = vsyncpa [#allocation3], 1 }
  0x40   :  { %209 = vsyncpa [#allocation3 + $0x1], 1 }
  0x41   :  { %210 = vsyncpa [#allocation4], 1 }
  0x42   :  { %212 = vsyncpa [#allocation4 + $0x1], 1 }

</bundles_post_ra>
